<compile_context>
chip_gen: v5e
topology: v5e:2x2
jax: 0.10.0
libtpu: 0.0.40
codegen_flags: <defaults>
</compile_context>

<pallas_src>
import jax
import jax.numpy as jnp
import numpy as np
from jax.experimental import pallas as pl
from jax.experimental.pallas import tpu as pltpu

_LANE = 128
_SUB = 8
_NEG = -1e9        # softplus(x) = relu(x) + log1p(exp(-|x|)) is exactly 0 here


def _round_up(x, m):
    return ((x + m - 1) // m) * m


def _cdiv(a, b):
    return -(-a // b)


def _tpu_is_v7():
    try:
        kind = jax.devices()[0].device_kind.lower()
    except Exception:
        return False
    return "7" in kind


def improved_loss(predictions, targets, valid, grid_size, num_classes,
                  lambda_coord=5.0, lambda_noobj=0.5):
    """predictions: (B, H*W, 5+C) float; targets: (B, T, 5) = [cls, cx, cy, w, h];
    valid: (B, T) bool mask of real (non-padded) targets."""
    predictions = predictions.astype(jnp.float32)
    B, HW, D = predictions.shape
    H, W = grid_size
    T = targets.shape[1]
    C = num_classes
    assert D == 5 + C and HW == H * W

    # ------------- XLA glue: target densification + per-target row gather -------
    cls_id = targets[..., 0].astype(jnp.int32)
    cx, cy = targets[..., 1], targets[..., 2]
    w, h = targets[..., 3], targets[..., 4]
    gx = jnp.floor(cx * W).astype(jnp.int32)
    gy = jnp.floor(cy * H).astype(jnp.int32)
    in_range = valid & (gx >= 0) & (gx < W) & (gy >= 0) & (gy < H)
    vf = in_range.astype(jnp.float32)                                  # (B, T)
    gi = jnp.where(in_range, gy * W + gx, 0).astype(jnp.int32)         # clamp -> safe gather

    # "primary" = first valid target landing on a given cell (dedups the obj mask)
    same_cell = (gi[:, :, None] == gi[:, None, :]) \
        & in_range[:, :, None] & in_range[:, None, :]                  # (B, T, T)
    earlier = jnp.tril(jnp.ones((T, T), dtype=jnp.bool_), k=-1)        # t' < t
    dup = jnp.any(same_cell & earlier[None], axis=-1)
    pf = (in_range & ~dup).astype(jnp.float32)                         # (B, T)

    tx = cx * W - gx.astype(jnp.float32)
    ty = cy * H - gy.astype(jnp.float32)
    tw = jnp.log(w * W + 1e-16)
    th = jnp.log(h * H + 1e-16)
    coord = jnp.stack([tx, ty, tw, th], axis=-1) * vf[..., None]       # (B, T, 4)
    cls_oh = jax.nn.one_hot(cls_id, C, dtype=jnp.float32)              # (B, T, C)
    tgt = jnp.concatenate([coord, vf[..., None], pf[..., None], cls_oh],
                          axis=-1)                                     # (B, T, 6+C)
    DT = 6 + C

    # exact per-target row gather (was an unrolled per-row copy loop in-kernel)
    gat = jnp.take_along_axis(predictions, gi[:, :, None], axis=1)     # (B, T, D)
    gat = jnp.where(in_range[..., None], gat, 0.0)                     # keep masked rows finite

    # ------------- per-generation tiling ----------------------------------------
    is_v7 = _tpu_is_v7()
    NC = 2 if (is_v7 and B % 2 == 0) else 1      # split over the 2 v7x TensorCores
    Bc = B // NC

    vmem_limit = (48 if is_v7 else 64) * 1024 * 1024
    budget = (12 if is_v7 else 28) * 1024 * 1024             # single-buffered blocks

    fixed = 2 * Bc * _round_up(T, _SUB) * _round_up(D, _LANE) * 4      # gat (x2 buf)
    fixed += 2 * Bc * _round_up(T, _SUB) * _round_up(DT, _LANE) * 4    # tgt (x2 buf)
    fixed += 3 * _SUB * _LANE * 4                                      # out + acc scratch
    rows = _cdiv(B * HW, _LANE)
    rows_per_core = _cdiv(rows, NC)
    rb_budget = max(_SUB, ((budget - fixed) // (2 * _LANE * 4)) // _SUB * _SUB)
    Rb = min(_round_up(rows_per_core, _SUB), rb_budget)
    steps = _cdiv(rows_per_core, Rb)
    Rtot = NC * steps * Rb

    # fully sublane/lane-dense conf slab; padding logits of -1e9 contribute 0
    conf_flat = predictions[:, :, 4].reshape(-1)
    conf_slab = jnp.pad(conf_flat, (0, Rtot * _LANE - B * HW),
                        constant_values=_NEG).reshape(Rtot, _LANE)

    # ------------- Pallas kernel -------------------------------------------------
    def kernel(gat_ref, tgt_ref, conf_ref, out_ref, acc_ref):
        i = pl.program_id(1)

        @pl.when(i == 0)
        def _():
            acc_ref[...] = jnp.zeros_like(acc_ref)

        # All-cells -log(1-sigmoid(x)) = softplus(x), clamped at 100 to match
        # torch's log clamp at -100; keep per-(sublane, lane) partial sums and
        # reduce to a scalar only once, on the last step.
        x = conf_ref[...]                                       # (Rb, 128)
        nl1ms = jnp.minimum(jnp.maximum(x, 0.0)
                            + jnp.log1p(jnp.exp(-jnp.abs(x))), 100.0)
        acc_ref[...] += jnp.sum(nl1ms.reshape(Rb // _SUB, _SUB, _LANE), axis=0)

        @pl.when(i == pl.num_programs(1) - 1)
        def _():
            g = gat_ref[...]                    # (Bc, T, D) gathered pred rows
            tg = tgt_ref[...]                   # (Bc, T, 6+C)
            vmask = tg[:, :, 4:5]               # valid in-range target
            pmask = tg[:, :, 5:6]               # first target on its cell

            pxy = jax.nn.sigmoid(g[:, :, 0:2])
            xy_s = jnp.sum(vmask * jnp.mean((pxy - tg[:, :, 0:2]) ** 2,
                                            axis=-1, keepdims=True))
            wh_s = jnp.sum(vmask * jnp.mean((g[:, :, 2:4] - tg[:, :, 2:4]) ** 2,
                                            axis=-1, keepdims=True))

            pcls = g[:, :, 5:]
            mx = jnp.max(pcls, axis=-1, keepdims=True)
            lse = mx + jnp.log(jnp.sum(jnp.exp(pcls - mx), axis=-1, keepdims=True))
            ce = lse - jnp.sum(tg[:, :, 6:] * pcls, axis=-1, keepdims=True)
            cls_s = jnp.sum(vmask * ce)
            nval_s = jnp.sum(vmask)

            # conf BCE on the (deduped) object cells from the gathered rows:
            #   -log(sigmoid(x)) = softplus(-x); -log(1-sigmoid(x)) = softplus(x)
            xo = g[:, :, 4:5]
            tail = jnp.log1p(jnp.exp(-jnp.abs(xo)))
            nls_o = jnp.minimum(jnp.maximum(-xo, 0.0) + tail, 100.0)
            nl1ms_o = jnp.minimum(jnp.maximum(xo, 0.0) + tail, 100.0)
            cobj_s = jnp.sum(pmask * nls_o)
            corr_s = jnp.sum(pmask * nl1ms_o)   # obj cells removed from noobj sum
            objc_s = jnp.sum(pmask)

            cnoobj_s = jnp.sum(acc_ref[...]) - corr_s

            # pack the 7 sums into one lane-dense output block, written once
            lane = jax.lax.broadcasted_iota(jnp.int32, (1, _SUB, _LANE), 2)
            packed = jnp.zeros((1, _SUB, _LANE), jnp.float32)
            for k, v in enumerate((xy_s, wh_s, cls_s, nval_s,
                                   cobj_s, cnoobj_s, objc_s)):
                packed = packed + jnp.where(lane == k, v, 0.0)
            out_ref[...] = packed

    # TODO(synk): on v7x, verify the leading "parallel" axis really shards across
    # the 2 TensorCores; if not, switch that axis to pltpu.CORE_PARALLEL.
    out = pl.pallas_call(
        kernel,
        out_shape=jax.ShapeDtypeStruct((NC, _SUB, _LANE), jnp.float32),
        grid_spec=pltpu.PrefetchScalarGridSpec(
            num_scalar_prefetch=0,
            grid=(NC, steps),
            in_specs=[
                pl.BlockSpec((Bc, T, D), lambda c, i: (c, 0, 0)),      # gathered rows
                pl.BlockSpec((Bc, T, DT), lambda c, i: (c, 0, 0)),     # target feats
                pl.BlockSpec((Rb, _LANE), lambda c, i: (c * steps + i, 0)),  # conf slab
            ],
            out_specs=pl.BlockSpec((1, _SUB, _LANE), lambda c, i: (c, 0, 0)),
            scratch_shapes=[pltpu.VMEM((_SUB, _LANE), jnp.float32)],
        ),
        compiler_params=pltpu.CompilerParams(
            dimension_semantics=("parallel", "arbitrary"),
            vmem_limit_bytes=vmem_limit),
    )(gat, tgt, conf_slab)

    sums = jnp.sum(out[:, 0, :], axis=0)
    xy, wh, cls_l, num_obj, cobj_sum, cnoobj_sum, obj_cells = (sums[k] for k in range(7))

    # ------------- final scalar normalizations (matches PyTorch ref) ------------
    num_noobj = B * HW - obj_cells
    conf_obj = jnp.where(obj_cells > 0, cobj_sum / jnp.maximum(obj_cells, 1.0), 0.0)
    conf_noobj = jnp.where(num_noobj > 0,
                           cnoobj_sum / jnp.maximum(num_noobj, 1.0), 0.0)
    d_obj = jnp.maximum(num_obj, 1.0)
    d_noobj = jnp.maximum(num_noobj, 1.0)
    total = (lambda_coord * (xy + wh) / d_obj
             + conf_obj / d_obj
             + lambda_noobj * conf_noobj / d_noobj
             + cls_l / d_obj)
    return {'xy': xy, 'wh': wh, 'conf_obj': conf_obj, 'conf_noobj': conf_noobj,
            'cls': cls_l, 'total': total, 'num_obj': num_obj,
            'num_noobj': num_noobj}


def _reference_loss(pred, targets, valid, grid_size, C,
                    lambda_coord=5.0, lambda_noobj=0.5):
    """Straight numpy port of the PyTorch forward (float64), for verification."""
    pred = np.asarray(pred, dtype=np.float64)
    targets = np.asarray(targets, dtype=np.float64)
    valid = np.asarray(valid)
    B, HW, _ = pred.shape
    H, W = grid_size
    sig = lambda x: 1.0 / (1.0 + np.exp(-x))
    pred_xy = sig(pred[..., :2]); pred_wh = pred[..., 2:4]
    pred_conf = sig(pred[..., 4]); pred_cls = pred[..., 5:]
    obj_mask = np.zeros((B, HW), dtype=bool)
    xy = wh = cls_l = 0.0
    num_obj = 0
    for b in range(B):
        for t in range(targets.shape[1]):
            if not valid[b, t]:
                continue
            cls_id, cx, cy, w, h = targets[b, t]
            gx, gy = int(cx * W), int(cy * H)
            if 0 <= gx < W and 0 <= gy < H:
                gi = gy * W + gx
                obj_mask[b, gi] = True
                tx, ty = cx * W - gx, cy * H - gy
                tw, th = np.log(w * W + 1e-16), np.log(h * H + 1e-16)
                xy += np.mean((pred_xy[b, gi] - np.array([tx, ty])) ** 2)
                wh += np.mean((pred_wh[b, gi] - np.array([tw, th])) ** 2)
                logits = pred_cls[b, gi]
                lse = np.log(np.sum(np.exp(logits - logits.max()))) + logits.max()
                cls_l += lse - logits[int(cls_id)]
                num_obj += 1
    noobj_mask = ~obj_mask
    conf_obj = (float(np.mean(-np.maximum(np.log(pred_conf[obj_mask]), -100.0)))
                if obj_mask.any() else 0.0)
    conf_noobj = (float(np.mean(-np.maximum(np.log(1 - pred_conf[noobj_mask]), -100.0)))
                  if noobj_mask.any() else 0.0)
    num_noobj = int(noobj_mask.sum())
    total = (lambda_coord * (xy + wh) / max(num_obj, 1)
             + conf_obj / max(num_obj, 1)
             + lambda_noobj * conf_noobj / max(num_noobj, 1)
             + cls_l / max(num_obj, 1))
    return {'xy': xy, 'wh': wh, 'conf_obj': conf_obj, 'conf_noobj': conf_noobj,
            'cls': cls_l, 'total': total, 'num_obj': num_obj,
            'num_noobj': num_noobj}


if __name__ == "__main__":
    key = jax.random.PRNGKey(0)
    B, H, W, C, T = 2, 8, 8, 4, 3          # batch, grid, classes, max targets
    D = 5 + C
    HW = H * W

    k1, k2, k3 = jax.random.split(key, 3)
    # TODO(synk): stands in for ImprovedYOLO's conv/BN/LeakyReLU backbone +
    # detector head, which stay in XLA; the Pallas kernel consumes its
    # (B, H*W, 5+C) output.
    predictions = jax.random.normal(k1, (B, HW, D), dtype=jnp.float32)
    cls_ids = jax.random.randint(k2, (B, T), 0, C).astype(jnp.float32)
    boxes = jax.random.uniform(k3, (B, T, 4), minval=0.05, maxval=0.9,
                               dtype=jnp.float32)
    targets = jnp.concatenate([cls_ids[..., None], boxes], axis=-1)   # (B, T, 5)
    valid = jnp.array([[True, True, False],
                       [True, False, False]])                         # ragged -> mask

    losses = improved_loss(predictions, targets, valid, (H, W), C)
    losses = {k: jax.block_until_ready(v) for k, v in losses.items()}

    ref = _reference_loss(predictions, targets, valid, (H, W), C)
    for name in ('xy', 'wh', 'conf_obj', 'conf_noobj', 'cls', 'total',
                 'num_obj', 'num_noobj'):
        np.testing.assert_allclose(np.asarray(losses[name], np.float64),
                                   ref[name], rtol=3e-3, atol=3e-3)

    print("KERNEL_OK")
</pallas_src>

<mosaic_0001>
module attributes {stable_mosaic.version = 11 : i64} {
  func.func @kernel(%arg0: i32, %arg1: i32, %arg2: memref<2x3x9xf32, #tpu.memory_space<vmem>>, %arg3: memref<2x3x10xf32, #tpu.memory_space<vmem>>, %arg4: memref<8x128xf32, #tpu.memory_space<vmem>>, %arg5: memref<1x8x128xf32, #tpu.memory_space<vmem>>, %arg6: memref<8x128xf32, #tpu.memory_space<vmem>>) attributes {dimension_semantics = [#tpu.dimension_semantics<parallel>, #tpu.dimension_semantics<arbitrary>], iteration_bounds = array<i64: 1, 1>, scalar_prefetch = 0 : i64, scratch_operands = 1 : i64, tpu.core_type = #tpu.core_type<tc>, window_params = [{transform_indices = @transform_0, window_bounds = array<i64: 2, 3, 9>}, {transform_indices = @transform_1, window_bounds = array<i64: 2, 3, 10>}, {transform_indices = @transform_2, window_bounds = array<i64: 8, 128>}, {transform_indices = @transform_3, window_bounds = array<i64: 1, 8, 128>}]} {
    %c0_i32 = arith.constant 0 : i32
    %0 = arith.cmpi eq, %arg1, %c0_i32 : i32
    %1 = arith.extui %0 : i1 to i32
    %c0_i32_0 = arith.constant 0 : i32
    %2 = arith.cmpi ne, %1, %c0_i32_0 : i32
    scf.if %2 {
      %cst_11 = arith.constant 0.000000e+00 : f32
      %22 = vector.broadcast %cst_11 : f32 to vector<8x128xf32>
      %c0_12 = arith.constant 0 : index
      %c0_13 = arith.constant 0 : index
      %23 = vector.load %arg6[%c0_12, %c0_13] : memref<8x128xf32, #tpu.memory_space<vmem>>, vector<8x128xf32>
      tpu.vector_store %arg6[%c0_12, %c0_13], %22 {strides = array<i32>} : memref<8x128xf32, #tpu.memory_space<vmem>>, vector<8x128xf32>,
    } else {
    }
    %c0 = arith.constant 0 : index
    %c0_1 = arith.constant 0 : index
    %3 = vector.load %arg4[%c0, %c0_1] : memref<8x128xf32, #tpu.memory_space<vmem>>, vector<8x128xf32>
    %cst = arith.constant 0.000000e+00 : f32
    %4 = vector.broadcast %cst : f32 to vector<8x128xf32>
    %5 = arith.maximumf %3, %4 : vector<8x128xf32>
    %6 = math.absf %3 : vector<8x128xf32>
    %cst_2 = arith.constant 0.000000e+00 : f32
    %7 = vector.broadcast %cst_2 : f32 to vector<8x128xf32>
    %8 = arith.subf %7, %6 : vector<8x128xf32>
    %9 = math.exp %8 : vector<8x128xf32>
    %10 = math.log1p %9 : vector<8x128xf32>
    %11 = arith.addf %5, %10 : vector<8x128xf32>
    %cst_3 = arith.constant 1.000000e+02 : f32
    %12 = vector.broadcast %cst_3 : f32 to vector<8x128xf32>
    %13 = arith.minimumf %11, %12 : vector<8x128xf32>
    %c0_4 = arith.constant 0 : index
    %c0_5 = arith.constant 0 : index
    %14 = vector.load %arg6[%c0_4, %c0_5] : memref<8x128xf32, #tpu.memory_space<vmem>>, vector<8x128xf32>
    %15 = vector.shape_cast %13 : vector<8x128xf32> to vector<1x8x128xf32>
    %cst_6 = arith.constant dense<0.000000e+00> : vector<8x128xf32>
    %16 = vector.multi_reduction <add>, %15, %cst_6 [0] : vector<1x8x128xf32> to vector<8x128xf32>
    %17 = arith.addf %14, %16 : vector<8x128xf32>
    %c0_7 = arith.constant 0 : index
    %c0_8 = arith.constant 0 : index
    %18 = vector.load %arg6[%c0_7, %c0_8] : memref<8x128xf32, #tpu.memory_space<vmem>>, vector<8x128xf32>
    tpu.vector_store %arg6[%c0_7, %c0_8], %17 {strides = array<i32>} : memref<8x128xf32, #tpu.memory_space<vmem>>, vector<8x128xf32>,
    %c0_i32_9 = arith.constant 0 : i32
    %19 = arith.cmpi eq, %arg1, %c0_i32_9 : i32
    %20 = arith.extui %19 : i1 to i32
    %c0_i32_10 = arith.constant 0 : i32
    %21 = arith.cmpi ne, %20, %c0_i32_10 : i32
    scf.if %21 {
      %c0_11 = arith.constant 0 : index
      %c0_12 = arith.constant 0 : index
      %c0_13 = arith.constant 0 : index
      %22 = vector.load %arg2[%c0_11, %c0_12, %c0_13] : memref<2x3x9xf32, #tpu.memory_space<vmem>>, vector<2x3x9xf32>
      %c0_14 = arith.constant 0 : index
      %c0_15 = arith.constant 0 : index
      %c0_16 = arith.constant 0 : index
      %23 = vector.load %arg3[%c0_14, %c0_15, %c0_16] : memref<2x3x10xf32, #tpu.memory_space<vmem>>, vector<2x3x10xf32>
      %24 = vector.extract_strided_slice %23 {offsets = [0, 0, 4], sizes = [2, 3, 1], strides = [1, 1, 1]} : vector<2x3x10xf32> to vector<2x3x1xf32>
      %25 = vector.extract_strided_slice %23 {offsets = [0, 0, 5], sizes = [2, 3, 1], strides = [1, 1, 1]} : vector<2x3x10xf32> to vector<2x3x1xf32>
      %26 = vector.extract_strided_slice %22 {offsets = [0, 0, 0], sizes = [2, 3, 2], strides = [1, 1, 1]} : vector<2x3x9xf32> to vector<2x3x2xf32>
      %27 = arith.negf %26 : vector<2x3x2xf32>
      %28 = math.exp %27 : vector<2x3x2xf32>
      %cst_17 = arith.constant 1.000000e+00 : f32
      %29 = vector.broadcast %cst_17 : f32 to vector<2x3x2xf32>
      %30 = arith.addf %29, %28 : vector<2x3x2xf32>
      %31 = arith.divf %29, %30 : vector<2x3x2xf32>
      %32 = vector.extract_strided_slice %23 {offsets = [0, 0, 0], sizes = [2, 3, 2], strides = [1, 1, 1]} : vector<2x3x10xf32> to vector<2x3x2xf32>
      %33 = arith.subf %31, %32 : vector<2x3x2xf32>
      %34 = arith.mulf %33, %33 : vector<2x3x2xf32>
      %cst_18 = arith.constant dense<0.000000e+00> : vector<2x3xf32>
      %35 = vector.multi_reduction <add>, %34, %cst_18 [2] : vector<2x3x2xf32> to vector<2x3xf32>
      %36 = vector.shape_cast %35 : vector<2x3xf32> to vector<2x3x1xf32>
      %cst_19 = arith.constant 2.000000e+00 : f32
      %37 = vector.broadcast %cst_19 : f32 to vector<2x3x1xf32>
      %38 = arith.divf %36, %37 : vector<2x3x1xf32>
      %39 = arith.mulf %24, %38 : vector<2x3x1xf32>
      %40 = vector.shape_cast %39 : vector<2x3x1xf32> to vector<1x2x3x1xf32>
      %cst_20 = arith.constant dense<0.000000e+00> : vector<1xf32>
      %41 = vector.multi_reduction <add>, %40, %cst_20 [1, 2, 3] : vector<1x2x3x1xf32> to vector<1xf32>
      %42 = vector.shape_cast %41 : vector<1xf32> to vector<1x1x1x1xf32>
      %43 = vector.extract %42[0, 0, 0, 0] : f32 from vector<1x1x1x1xf32>
      %44 = vector.extract_strided_slice %22 {offsets = [0, 0, 2], sizes = [2, 3, 2], strides = [1, 1, 1]} : vector<2x3x9xf32> to vector<2x3x2xf32>
      %45 = vector.extract_strided_slice %23 {offsets = [0, 0, 2], sizes = [2, 3, 2], strides = [1, 1, 1]} : vector<2x3x10xf32> to vector<2x3x2xf32>
      %46 = arith.subf %44, %45 : vector<2x3x2xf32>
      %47 = arith.mulf %46, %46 : vector<2x3x2xf32>
      %cst_21 = arith.constant dense<0.000000e+00> : vector<2x3xf32>
      %48 = vector.multi_reduction <add>, %47, %cst_21 [2] : vector<2x3x2xf32> to vector<2x3xf32>
      %49 = vector.shape_cast %48 : vector<2x3xf32> to vector<2x3x1xf32>
      %cst_22 = arith.constant 2.000000e+00 : f32
      %50 = vector.broadcast %cst_22 : f32 to vector<2x3x1xf32>
      %51 = arith.divf %49, %50 : vector<2x3x1xf32>
      %52 = arith.mulf %24, %51 : vector<2x3x1xf32>
      %53 = vector.shape_cast %52 : vector<2x3x1xf32> to vector<1x2x3x1xf32>
      %cst_23 = arith.constant dense<0.000000e+00> : vector<1xf32>
      %54 = vector.multi_reduction <add>, %53, %cst_23 [1, 2, 3] : vector<1x2x3x1xf32> to vector<1xf32>
      %55 = vector.shape_cast %54 : vector<1xf32> to vector<1x1x1x1xf32>
      %56 = vector.extract %55[0, 0, 0, 0] : f32 from vector<1x1x1x1xf32>
      %57 = vector.extract_strided_slice %22 {offsets = [0, 0, 5], sizes = [2, 3, 4], strides = [1, 1, 1]} : vector<2x3x9xf32> to vector<2x3x4xf32>
      %cst_24 = arith.constant dense<0xFF800000> : vector<2x3xf32>
      %58 = vector.multi_reduction <maximumf>, %57, %cst_24 [2] : vector<2x3x4xf32> to vector<2x3xf32>
      %59 = vector.shape_cast %58 : vector<2x3xf32> to vector<2x3x1xf32>
      %60 = vector.broadcast %59 : vector<2x3x1xf32> to vector<2x3x4xf32>
      %61 = arith.subf %57, %60 : vector<2x3x4xf32>
      %62 = math.exp %61 : vector<2x3x4xf32>
      %cst_25 = arith.constant dense<0.000000e+00> : vector<2x3xf32>
      %63 = vector.multi_reduction <add>, %62, %cst_25 [2] : vector<2x3x4xf32> to vector<2x3xf32>
      %64 = vector.shape_cast %63 : vector<2x3xf32> to vector<2x3x1xf32>
      %65 = math.log %64 : vector<2x3x1xf32>
      %66 = arith.addf %59, %65 : vector<2x3x1xf32>
      %67 = vector.extract_strided_slice %23 {offsets = [0, 0, 6], sizes = [2, 3, 4], strides = [1, 1, 1]} : vector<2x3x10xf32> to vector<2x3x4xf32>
      %68 = arith.mulf %67, %57 : vector<2x3x4xf32>
      %cst_26 = arith.constant dense<0.000000e+00> : vector<2x3xf32>
      %69 = vector.multi_reduction <add>, %68, %cst_26 [2] : vector<2x3x4xf32> to vector<2x3xf32>
      %70 = vector.shape_cast %69 : vector<2x3xf32> to vector<2x3x1xf32>
      %71 = arith.subf %66, %70 : vector<2x3x1xf32>
      %72 = arith.mulf %24, %71 : vector<2x3x1xf32>
      %73 = vector.shape_cast %72 : vector<2x3x1xf32> to vector<1x2x3x1xf32>
      %cst_27 = arith.constant dense<0.000000e+00> : vector<1xf32>
      %74 = vector.multi_reduction <add>, %73, %cst_27 [1, 2, 3] : vector<1x2x3x1xf32> to vector<1xf32>
      %75 = vector.shape_cast %74 : vector<1xf32> to vector<1x1x1x1xf32>
      %76 = vector.extract %75[0, 0, 0, 0] : f32 from vector<1x1x1x1xf32>
      %77 = vector.shape_cast %24 : vector<2x3x1xf32> to vector<1x2x3x1xf32>
      %cst_28 = arith.constant dense<0.000000e+00> : vector<1xf32>
      %78 = vector.multi_reduction <add>, %77, %cst_28 [1, 2, 3] : vector<1x2x3x1xf32> to vector<1xf32>
      %79 = vector.shape_cast %78 : vector<1xf32> to vector<1x1x1x1xf32>
      %80 = vector.extract %79[0, 0, 0, 0] : f32 from vector<1x1x1x1xf32>
      %81 = vector.extract_strided_slice %22 {offsets = [0, 0, 4], sizes = [2, 3, 1], strides = [1, 1, 1]} : vector<2x3x9xf32> to vector<2x3x1xf32>
      %82 = math.absf %81 : vector<2x3x1xf32>
      %cst_29 = arith.constant 0.000000e+00 : f32
      %83 = vector.broadcast %cst_29 : f32 to vector<2x3x1xf32>
      %84 = arith.subf %83, %82 : vector<2x3x1xf32>
      %85 = math.exp %84 : vector<2x3x1xf32>
      %86 = math.log1p %85 : vector<2x3x1xf32>
      %cst_30 = arith.constant 0.000000e+00 : f32
      %87 = vector.broadcast %cst_30 : f32 to vector<2x3x1xf32>
      %88 = arith.subf %87, %81 : vector<2x3x1xf32>
      %cst_31 = arith.constant 0.000000e+00 : f32
      %89 = vector.broadcast %cst_31 : f32 to vector<2x3x1xf32>
      %90 = arith.maximumf %88, %89 : vector<2x3x1xf32>
      %91 = arith.addf %90, %86 : vector<2x3x1xf32>
      %cst_32 = arith.constant 1.000000e+02 : f32
      %92 = vector.broadcast %cst_32 : f32 to vector<2x3x1xf32>
      %93 = arith.minimumf %91, %92 : vector<2x3x1xf32>
      %cst_33 = arith.constant 0.000000e+00 : f32
      %94 = vector.broadcast %cst_33 : f32 to vector<2x3x1xf32>
      %95 = arith.maximumf %81, %94 : vector<2x3x1xf32>
      %96 = arith.addf %95, %86 : vector<2x3x1xf32>
      %cst_34 = arith.constant 1.000000e+02 : f32
      %97 = vector.broadcast %cst_34 : f32 to vector<2x3x1xf32>
      %98 = arith.minimumf %96, %97 : vector<2x3x1xf32>
      %99 = arith.mulf %25, %93 : vector<2x3x1xf32>
      %100 = vector.shape_cast %99 : vector<2x3x1xf32> to vector<1x2x3x1xf32>
      %cst_35 = arith.constant dense<0.000000e+00> : vector<1xf32>
      %101 = vector.multi_reduction <add>, %100, %cst_35 [1, 2, 3] : vector<1x2x3x1xf32> to vector<1xf32>
      %102 = vector.shape_cast %101 : vector<1xf32> to vector<1x1x1x1xf32>
      %103 = vector.extract %102[0, 0, 0, 0] : f32 from vector<1x1x1x1xf32>
      %104 = arith.mulf %25, %98 : vector<2x3x1xf32>
      %105 = vector.shape_cast %104 : vector<2x3x1xf32> to vector<1x2x3x1xf32>
      %cst_36 = arith.constant dense<0.000000e+00> : vector<1xf32>
      %106 = vector.multi_reduction <add>, %105, %cst_36 [1, 2, 3] : vector<1x2x3x1xf32> to vector<1xf32>
      %107 = vector.shape_cast %106 : vector<1xf32> to vector<1x1x1x1xf32>
      %108 = vector.extract %107[0, 0, 0, 0] : f32 from vector<1x1x1x1xf32>
      %109 = vector.shape_cast %25 : vector<2x3x1xf32> to vector<1x2x3x1xf32>
      %cst_37 = arith.constant dense<0.000000e+00> : vector<1xf32>
      %110 = vector.multi_reduction <add>, %109, %cst_37 [1, 2, 3] : vector<1x2x3x1xf32> to vector<1xf32>
      %111 = vector.shape_cast %110 : vector<1xf32> to vector<1x1x1x1xf32>
      %112 = vector.extract %111[0, 0, 0, 0] : f32 from vector<1x1x1x1xf32>
      %c0_38 = arith.constant 0 : index
      %c0_39 = arith.constant 0 : index
      %113 = vector.load %arg6[%c0_38, %c0_39] : memref<8x128xf32, #tpu.memory_space<vmem>>, vector<8x128xf32>
      %114 = vector.shape_cast %113 : vector<8x128xf32> to vector<1x8x128xf32>
      %cst_40 = arith.constant dense<0.000000e+00> : vector<1xf32>
      %115 = vector.multi_reduction <add>, %114, %cst_40 [1, 2] : vector<1x8x128xf32> to vector<1xf32>
      %116 = vector.shape_cast %115 : vector<1xf32> to vector<1x1x1xf32>
      %117 = vector.extract %116[0, 0, 0] : f32 from vector<1x1x1xf32>
      %118 = arith.subf %117, %108 : f32
      %119 = tpu.iota {dimensions = array<i32: 2>} : vector<1x8x128xi32>
      %cst_41 = arith.constant 0.000000e+00 : f32
      %120 = vector.broadcast %cst_41 : f32 to vector<1x8x128xf32>
      %c0_i32_42 = arith.constant 0 : i32
      %121 = vector.broadcast %c0_i32_42 : i32 to vector<1x8x128xi32>
      %122 = arith.cmpi eq, %119, %121 : vector<1x8x128xi32>
      %cst_43 = arith.constant 0.000000e+00 : f32
      %123 = vector.broadcast %43 : f32 to vector<1x8x128xf32>
      %124 = vector.broadcast %cst_43 : f32 to vector<1x8x128xf32>
      %125 = arith.select %122, %123, %124 : vector<1x8x128xi1>, vector<1x8x128xf32>
      %126 = arith.addf %120, %125 : vector<1x8x128xf32>
      %c1_i32 = arith.constant 1 : i32
      %127 = vector.broadcast %c1_i32 : i32 to vector<1x8x128xi32>
      %128 = arith.cmpi eq, %119, %127 : vector<1x8x128xi32>
      %cst_44 = arith.constant 0.000000e+00 : f32
      %129 = vector.broadcast %56 : f32 to vector<1x8x128xf32>
      %130 = vector.broadcast %cst_44 : f32 to vector<1x8x128xf32>
      %131 = arith.select %128, %129, %130 : vector<1x8x128xi1>, vector<1x8x128xf32>
      %132 = arith.addf %126, %131 : vector<1x8x128xf32>
      %c2_i32 = arith.constant 2 : i32
      %133 = vector.broadcast %c2_i32 : i32 to vector<1x8x128xi32>
      %134 = arith.cmpi eq, %119, %133 : vector<1x8x128xi32>
      %cst_45 = arith.constant 0.000000e+00 : f32
      %135 = vector.broadcast %76 : f32 to vector<1x8x128xf32>
      %136 = vector.broadcast %cst_45 : f32 to vector<1x8x128xf32>
      %137 = arith.select %134, %135, %136 : vector<1x8x128xi1>, vector<1x8x128xf32>
      %138 = arith.addf %132, %137 : vector<1x8x128xf32>
      %c3_i32 = arith.constant 3 : i32
      %139 = vector.broadcast %c3_i32 : i32 to vector<1x8x128xi32>
      %140 = arith.cmpi eq, %119, %139 : vector<1x8x128xi32>
      %cst_46 = arith.constant 0.000000e+00 : f32
      %141 = vector.broadcast %80 : f32 to vector<1x8x128xf32>
      %142 = vector.broadcast %cst_46 : f32 to vector<1x8x128xf32>
      %143 = arith.select %140, %141, %142 : vector<1x8x128xi1>, vector<1x8x128xf32>
      %144 = arith.addf %138, %143 : vector<1x8x128xf32>
      %c4_i32 = arith.constant 4 : i32
      %145 = vector.broadcast %c4_i32 : i32 to vector<1x8x128xi32>
      %146 = arith.cmpi eq, %119, %145 : vector<1x8x128xi32>
      %cst_47 = arith.constant 0.000000e+00 : f32
      %147 = vector.broadcast %103 : f32 to vector<1x8x128xf32>
      %148 = vector.broadcast %cst_47 : f32 to vector<1x8x128xf32>
      %149 = arith.select %146, %147, %148 : vector<1x8x128xi1>, vector<1x8x128xf32>
      %150 = arith.addf %144, %149 : vector<1x8x128xf32>
      %c5_i32 = arith.constant 5 : i32
      %151 = vector.broadcast %c5_i32 : i32 to vector<1x8x128xi32>
      %152 = arith.cmpi eq, %119, %151 : vector<1x8x128xi32>
      %cst_48 = arith.constant 0.000000e+00 : f32
      %153 = vector.broadcast %118 : f32 to vector<1x8x128xf32>
      %154 = vector.broadcast %cst_48 : f32 to vector<1x8x128xf32>
      %155 = arith.select %152, %153, %154 : vector<1x8x128xi1>, vector<1x8x128xf32>
      %156 = arith.addf %150, %155 : vector<1x8x128xf32>
      %c6_i32 = arith.constant 6 : i32
      %157 = vector.broadcast %c6_i32 : i32 to vector<1x8x128xi32>
      %158 = arith.cmpi eq, %119, %157 : vector<1x8x128xi32>
      %cst_49 = arith.constant 0.000000e+00 : f32
      %159 = vector.broadcast %112 : f32 to vector<1x8x128xf32>
      %160 = vector.broadcast %cst_49 : f32 to vector<1x8x128xf32>
      %161 = arith.select %158, %159, %160 : vector<1x8x128xi1>, vector<1x8x128xf32>
      %162 = arith.addf %156, %161 : vector<1x8x128xf32>
      %c0_50 = arith.constant 0 : index
      %c0_51 = arith.constant 0 : index
      %c0_52 = arith.constant 0 : index
      %163 = vector.load %arg5[%c0_50, %c0_51, %c0_52] : memref<1x8x128xf32, #tpu.memory_space<vmem>>, vector<1x8x128xf32>
      tpu.vector_store %arg5[%c0_50, %c0_51, %c0_52], %162 {strides = array<i32>} : memref<1x8x128xf32, #tpu.memory_space<vmem>>, vector<1x8x128xf32>,
    } else {
    }
    return
  }
  func.func @transform_0(%arg0: i32, %arg1: i32) -> (i32, i32, i32) {
    %c0_i32 = arith.constant 0 : i32
    %c0_i32_0 = arith.constant 0 : i32
    %c0_i32_1 = arith.constant 0 : i32
    return %arg0, %c0_i32, %c0_i32_0 : i32, i32, i32
  }
  func.func @transform_1(%arg0: i32, %arg1: i32) -> (i32, i32, i32) {
    %c0_i32 = arith.constant 0 : i32
    %c0_i32_0 = arith.constant 0 : i32
    %c0_i32_1 = arith.constant 0 : i32
    return %arg0, %c0_i32, %c0_i32_0 : i32, i32, i32
  }
  func.func @transform_2(%arg0: i32, %arg1: i32) -> (i32, i32) {
    %c1_i32 = arith.constant 1 : i32
    %0 = arith.muli %arg0, %c1_i32 : i32
    %1 = arith.addi %0, %arg1 : i32
    %c0_i32 = arith.constant 0 : i32
    %c0_i32_0 = arith.constant 0 : i32
    return %1, %c0_i32 : i32, i32
  }
  func.func @transform_3(%arg0: i32, %arg1: i32) -> (i32, i32, i32) {
    %c0_i32 = arith.constant 0 : i32
    %c0_i32_0 = arith.constant 0 : i32
    %c0_i32_1 = arith.constant 0 : i32
    return %arg0, %c0_i32, %c0_i32_0 : i32, i32, i32
  }
}

</mosaic_0001>

<bundles_post_ra>
// kernel: tpu_custom_call.1
= control target key start
LH: loop header
LB: loop body
LE: loop exit
PB: predicated region body
PF: predicated region fallthrough
CT: control target
= control target key end

     0   :  { %s553_s14 = smov 1   ;;  %vm188_vm0 = vcmask 67624   ;;  %s699_s0 = inlined_call_operand.vmem [shape: f32[2,3,9], index: 0, kind: input, shape index: {}]   ;;  %s700_s1 = inlined_call_operand.vmem [shape: f32[2,3,10], index: 1, kind: input, shape index: {}]   ;;  %s701_s2 = inlined_call_operand.vmem [shape: f32[8,128], index: 2, kind: input, shape index: {}]   ;;  %s702_s3 = inlined_call_operand.hbm [shape: f32[1,8,128], index: 3, kind: output, shape index: {}]  }
   0x1   :  { %v583_v0 = vld [vmem:[%s699_s0] sm:$0x7]  ;;  %v592_v4 = vld [vmem:[%s699_s0 + $0x4] sm:$0x7] }
   0x2   :  { %224 = vrot.lane.b32.xlu1 %v583_v0, %s553_s14  ;;  %v290_v1 = vand.u32 2147483647, %v583_v0  ;;  %v472_v2 = vmul.f32 -1.442695, %v583_v0  ;;  %v189_v5 = vsel %vm188_vm0, %v583_v0, -inf }
   0x4   :  { %v292_v3 = vsub.f32 0.0, %v290_v1 }
   0x5   :  { %8 = vsyncpa [#allocation4], 0  ;;  %190 = vmax.xlane.f32.xlu0 %v189_v5  ;;  %497 = vpow2.f32 %v472_v2  ;;  %v473_v6 = vmul.f32 -1.442695, %v592_v4  ;;  %v599_v8 = vld [vmem:[%s700_s1] sm:$0x7] }
   0x6   :  { %v294_v7 = vmul.f32 1.442695, %v292_v3  ;;  %v146_v9 = vsub.f32 %v583_v0, %v599_v8  ;;  %v192_v10 = vsel %vm188_vm0, %v592_v4, -inf  ;;  %v609_v16 = vld [vmem:[%s700_s1 + $0x4] sm:$0x7]  ;;  %s554_s20 = smov 126  }
   0x7   :  { %499 = vpow2.f32 %v473_v6  ;;  %v147_v20 = vsub.f32 %v592_v4, %v609_v16  ;;  %v316_v24 = vsub.f32 0.0, %v583_v0  ;;  %vm107_vm10 = vcmask 10240   ;;  %s555_s1 = smov 122   ;;  %s556_s21 = smov 123  }
   0x8   :  { %501 = vpow2.f32 %v294_v7  ;;  %v148_v15 = vmul.f32 %v146_v9, %v146_v9  ;;  %v291_v58 = vand.u32 2147483647, %v592_v4  ;;  %v317_v5 = vsub.f32 0.0, %v592_v4  ;;  %s558_s22 = smov 124   ;;  %s559_s6 = smov [#allocation3]  }
   0x9   :  { %v149_v27 = vmul.f32 %v147_v20, %v147_v20  ;;  %v318_v34 = vmax.f32 %v316_v24, 0.0  ;;  %vm209_vm13 = vcmask 26624   ;;  %vm133_vm14 = vcmask 2048   ;;  %s455_s7 = sshll.u32 %s559_s6, 4  ;;  %s457_s10 = sshll.u32 %s702_s3, 4  ;;  %s456_s7 = int_to_ptr.vmem [resolvable:$true] %s455_s7  ;;  %s458_s10 = int_to_ptr.hbm [resolvable:$true] %s457_s10 }
   0xa   :  { %226 = vrot.lane.b32.xlu1 %v592_v4, %s553_s14  ;;  %v293_v59 = vsub.f32 0.0, %v291_v58  ;;  %v319_v9 = vmax.f32 %v317_v5, 0.0 }
   0xb   :  { %v498_v11 = vpop.eup %497 }
   0xc   :  { %v71_v12 = vadd.f32 1.0, %v498_v11  ;;  %v296_v60 = vmul.f32 1.442695, %v293_v59 }
   0xd   :  { %v500_v13 = vpop.eup %499  ;;  %193 = vmax.xlane.f32.xlu0 %v192_v10 }
   0xe   :  { %v502_v14 = vpop.eup %501  ;;  %503 = vrcp.f32 %v71_v12  ;;  %v72_v17 = vadd.f32 1.0, %v500_v13  ;;  %v84_v26 = vand.u32 2147483648, %v71_v12  ;;  %vm78_vm1 = vweird.f32 %v71_v12 }
   0xf   :  { %v298_v18 = vadd.f32 1.0, %v502_v14  ;;  %v301_v19 = vmul.f32 -0.5, %v502_v14  ;;  %v304_v23 = vand.u32 2147483647, %v502_v14  ;;  %v82_v30 = vand.u32 2147483647, %v71_v12 }
  0x10   :  { %505 = vrcp.f32 %v72_v17  ;;  %v85_v36 = vor.u32 1.1754944e-38, %v84_v26  ;;  %v99_v37 = vand.u32 2147483648, %v72_v17  ;;  %vm93_vm5 = vweird.f32 %v72_v17 }
  0x11   :  { %507 = vlog2.f32 %v298_v18  ;;  %v302_v21 = vadd.f32 1.0, %v301_v19  ;;  %vm305_vm3 = vcmp.lt.f32.partialorder %v304_v23, 0.0004427343  ;;  %v97_v40 = vand.u32 2147483647, %v72_v17 }
  0x12   :  { %152 = vrot.lane.b32.xlu1 %v148_v15, %s554_s20  ;;  %vm83_vm7 = vcmp.eq.f32.partialorder %v82_v30, 8.507059e+37  ;;  %v100_v46 = vor.u32 1.1754944e-38, %v99_v37  ;;  %509 = vpow2.f32 %v296_v60 }
  0x13   :  { %v303_v31 = vmul.f32 %v502_v14, %v302_v21  ;;  %vm98_vm9 = vcmp.eq.f32.partialorder %v97_v40, 8.507059e+37 }
  0x14   :  { %v504_v22 = vpop.eup %503 }
  0x15   :  { %v74_v25 = vmul.f32 %v504_v22, %v71_v12  ;;  %vm79_vm2 = vweird.f32 %v504_v22 }
  0x16   :  { %v506_v28 = vpop.eup %505  ;;  %vm80_vm4 = vmor %vm78_vm1, %vm79_vm2 }
  0x17   :  { %v75_v29 = vsub.f32 1.0, %v74_v25  ;;  %v508_v32 = vpop.eup %507  ;;  %v89_v33 = vmul.f32 %v506_v28, %v72_v17  ;;  %vm94_vm6 = vweird.f32 %v506_v28  ;;  %v557_v25 = vmov 2.0  }
  0x18   :  { %v300_v38 = vmul.f32 0.6931472, %v508_v32  ;;  %vm95_vm8 = vmor %vm93_vm5, %vm94_vm6  ;;  %v510_v61 = vpop.eup %509 }
  0x19   :  { %v76_v35 = vmul.f32 %v504_v22, %v75_v29  ;;  %v90_v39 = vsub.f32 1.0, %v89_v33  ;;  %v307_v62 = vadd.f32 1.0, %v510_v61  ;;  %v310_v63 = vmul.f32 -0.5, %v510_v61 }
  0x1a   :  { %154 = vrot.lane.b32.xlu1 %v149_v27, %s554_s20  ;;  %v615_v42 = vsel %vm305_vm3, %v303_v31, %v300_v38  ;;  %v313_v3 = vand.u32 2147483647, %v510_v61 }
  0x1b   :  { %v77_v41 = vadd.f32 %v504_v22, %v76_v35  ;;  %v91_v43 = vmul.f32 %v506_v28, %v90_v39  ;;  %v320_v44 = vadd.f32 %v318_v34, %v615_v42  ;;  %511 = vlog2.f32 %v307_v62 }
  0x1c   :  { %v311_v1 = vadd.f32 1.0, %v310_v63  ;;  %vm314_vm11 = vcmp.lt.f32.partialorder %v313_v3, 0.0004427343 }
  0x1d   :  { %v81_v45 = vsel %vm80_vm4, %v504_v22, %v77_v41  ;;  %v92_v48 = vadd.f32 %v506_v28, %v91_v43  ;;  %v322_v49 = vmin.f32 %v320_v44, 100.0 }
  0x1e   :  { %v86_v47 = vsel %vm83_vm7, %v85_v36, %v81_v45  ;;  %v312_v7 = vmul.f32 %v510_v61, %v311_v1  ;;  %v324_v61 = vmax.f32 %v583_v0, 0.0 }
  0x1f   :  { %v103_v50 = vsub.f32 %v86_v47, %v599_v8  ;;  %v96_v51 = vsel %vm95_vm8, %v506_v28, %v92_v48 }
  0x20   :  { %v101_v53 = vsel %vm98_vm9, %v100_v46, %v96_v51  ;;  %v326_v62 = vadd.f32 %v324_v61, %v615_v42 }
  0x21   :  { %v105_v52 = vmul.f32 %v103_v50, %v103_v50  ;;  %v104_v54 = vsub.f32 %v101_v53, %v609_v16  ;;  %v512_v2 = vpop.eup %511  ;;  %v325_v50 = vmax.f32 %v592_v4, 0.0 }
  0x22   :  { %332 = vrot.lane.b32.xlu1 %v322_v49, %s553_s14  ;;  %v309_v6 = vmul.f32 0.6931472, %v512_v2  ;;  %v328_v63 = vmin.f32 %v326_v62, 100.0 }
  0x23   :  { %v108_v55 = vsel %vm107_vm10, %v105_v52, 0.0  ;;  %v106_v56 = vmul.f32 %v104_v54, %v104_v54 }
  0x24   :  { %109 = vadd.xlane.f32.xlu2 %v108_v55  ;;  %v315_v10 = vsel %vm314_vm11, %v312_v7, %v309_v6 }
  0x25   :  { %v111_v57 = vsel %vm107_vm10, %v106_v56, 0.0  ;;  %v321_v11 = vadd.f32 %v319_v9, %v315_v10  ;;  %v327_v51 = vadd.f32 %v325_v50, %v315_v10 }
  0x26   :  { %112 = vadd.xlane.f32.xlu0 %v111_v57 }
  0x27   :  { %v323_v12 = vmin.f32 %v321_v11, 100.0  ;;  %v329_v52 = vmin.f32 %v327_v51, 100.0  ;;  %v37_v51 = vld [vmem:[%s701_s2] sm:$0xff] }
  0x3a   :  { %334 = vrot.lane.b32.xlu0 %v323_v12, %s553_s14 }
  0x74   :  { %v225_v13 = vpop.permute.xlu1 %224 }
  0x75   :  { %v230_v14 = vmul.f32 %v225_v13, %v599_v8 }
  0x77   :  { %234 = vrot.lane.b32.xlu1 %v230_v14, %s555_s1 }
  0x78   :  { %v629_v20 = vpop.xlane.xlu0 %190 }
  0x79   :  { %v195_v34 = vsub.f32 %v583_v0, %v629_v20 }
  0x7b   :  { %v197_v37 = vmul.f32 1.442695, %v195_v34 }
  0x7c   :  { %v227_v15 = vpop.permute.xlu1 %226 }
  0x7d   :  { %v231_v17 = vmul.f32 %v227_v15, %v609_v16 }
  0x7f   :  { %236 = vrot.lane.b32.xlu2 %v231_v17, %s555_s1 }
  0x80   :  { %v631_v21 = vpop.xlane.xlu0 %193 }
  0x81   :  { %v196_v22 = vsub.f32 %v592_v4, %v631_v21 }
  0x83   :  { %v199_v23 = vmul.f32 1.442695, %v196_v22 }
  0x84   :  { %v153_v18 = vpop.permute.xlu1 %152 }
  0x85   :  { %v158_v19 = vsel %vm107_vm10, %v153_v18, 0.0  ;;  %513 = vpow2.f32 %v199_v23 }
  0x86   :  { %159 = vadd.xlane.f32.xlu0 %v158_v19  ;;  %515 = vrcp.f32 %v557_v25 }
  0x87   :  { %517 = vpow2.f32 %v197_v37 }
  0x8b   :  { %v514_v24 = vpop.eup %513 }
  0x8c   :  { %v155_v26 = vpop.permute.xlu1 %154  ;;  %v516_v28 = vpop.eup %515 }
  0x8d   :  { %v161_v27 = vsel %vm107_vm10, %v155_v26, 0.0  ;;  %v115_v29 = vmul.f32 2.0, %v516_v28  ;;  %vm119_vm12 = vweird.f32 %v516_v28  ;;  %v518_v43 = vpop.eup %517 }
  0x8f   :  { %v116_v30 = vsub.f32 1.0, %v115_v29 }
  0x91   :  { %v117_v31 = vmul.f32 %v516_v28, %v116_v30 }
  0x93   :  { %v118_v32 = vadd.f32 %v516_v28, %v117_v31 }
  0x94   :  { %v333_v44 = vpop.permute.xlu1 %332 }
  0x95   :  { %v120_v35 = vsel %vm119_vm12, %v516_v28, %v118_v32  ;;  %v338_v56 = vmul.f32 %v333_v44, %v599_v8 }
  0x97   :  { %v110_v33 = vpop.xlane.xlu2 %109 }
  0x98   :  { %v121_v36 = vmul.f32 %v120_v35, %v110_v33 }
  0x99   :  { %v113_v39 = vpop.xlane.xlu0 %112 }
  0x9a   :  { %205 = vrot.lane.b32.xlu0 %v514_v24, %s556_s21  ;;  %v123_v38 = vmul.f32 %v121_v36, %v599_v8  ;;  %v122_v40 = vmul.f32 %v120_v35, %v113_v39 }
  0x9c   :  { %127 = vrot.lane.b32.xlu1 %v123_v38, %s558_s22  ;;  %v124_v41 = vmul.f32 %v122_v40, %v609_v16 }
  0xa4   :  { %129 = vrot.lane.b32.xlu1 %v124_v41, %s558_s22 }
  0xa8   :  { %162 = vadd.xlane.f32.xlu2 %v161_v27 }
  0xac   :  { %v335_v49 = vpop.permute.xlu0 %334 }
  0xad   :  { %v339_v42 = vmul.f32 %v335_v49, %v609_v16 }
  0xc0   :  { %203 = vrot.lane.b32.xlu2 %v518_v43, %s556_s21 }
  0xd9   :  { %v237_v45 = vpop.permute.xlu2 %236 }
  0xda   :  { %v243_v46 = vsel %vm209_vm13, %v237_v45, 0.0 }
  0xe9   :  { %v235_v47 = vpop.permute.xlu1 %234  ;;  %244 = vadd.xlane.f32.xlu2 %v243_v46 }
  0xea   :  { %v240_v48 = vsel %vm209_vm13, %v235_v47, 0.0 }
  0xeb   :  { %241 = vadd.xlane.f32.xlu0 %v240_v48 }
  0xf9   :  { %v160_v53 = vpop.xlane.xlu0 %159 }
  0xfa   :  { %v164_v54 = vmul.f32 %v160_v53, %v120_v35 }
  0xfc   :  { %v166_v55 = vmul.f32 %v164_v54, %v599_v8 }
  0xff   :  { %364 = vrot.lane.b32.xlu0 %v329_v52, %s553_s14  ;;  %v39_v52 = vand.u32 2147483647, %v37_v51 }
 0x107   :  { %170 = vrot.lane.b32.xlu0 %v166_v55, %s558_s22  ;;  %v40_v55 = vsub.f32 0.0, %v39_v52 }
 0x10c   :  { %v206_v1 = vpop.permute.xlu0 %205 }
 0x10d   :  { %v213_v2 = vsel %vm209_vm13, %v206_v1, 0.0 }
 0x10e   :  { %v128_v3 = vpop.permute.xlu1 %127 }
 0x10f   :  { %272 = vrot.lane.b32.xlu0 %v599_v8, %s558_s22  ;;  %v134_v6 = vsel %vm133_vm14, %v128_v3, 0.0 }
 0x116   :  { %v130_v5 = vpop.permute.xlu1 %129 }
 0x117   :  { %342 = vrot.lane.b32.xlu0 %v338_v56, %s556_s21  ;;  %v135_v7 = vsel %vm133_vm14, %v130_v5, 0.0 }
 0x118   :  { %v136_v0 = vadd.f32 %v135_v7, %v134_v6 }
 0x11b   :  { %v163_v57 = vpop.xlane.xlu2 %162 }
 0x11c   :  { %v165_v58 = vmul.f32 %v163_v57, %v120_v35 }
 0x11e   :  { %v167_v4 = vmul.f32 %v165_v58, %v609_v16  ;;  %v41_v58 = vmul.f32 1.442695, %v40_v55 }
 0x120   :  { %172 = vrot.lane.b32.xlu1 %v167_v4, %s558_s22 }
 0x123   :  { %v204_v59 = vpop.permute.xlu2 %203 }
 0x124   :  { %v210_v60 = vsel %vm209_vm13, %v204_v59, 0.0 }
 0x125   :  { %211 = vadd.xlane.f32.xlu2 %v210_v60 }
 0x13d   :  { %362 = vrot.lane.b32.xlu2 %v328_v63, %s553_s14 }
 0x14a   :  { %214 = vadd.xlane.f32.xlu1 %v213_v2 }
 0x15c   :  { %v245_v9 = vpop.xlane.xlu2 %244 }
 0x15e   :  { %v242_v17 = vpop.xlane.xlu0 %241 }
 0x163   :  { %274 = vrot.lane.b32.xlu1 %v609_v16, %s558_s22 }
 0x166   :  { %137 = vadd.xlane.f32.xlu2 %v136_v0 }
 0x16b   :  { %344 = vrot.lane.b32.xlu1 %v339_v42, %s556_s21 }
 0x171   :  { %v365_v28 = vpop.permute.xlu0 %364 }
 0x172   :  { %v369_v29 = vmul.f32 %v365_v28, %v609_v16 }
 0x179   :  { %v171_v36 = vpop.permute.xlu0 %170 }
 0x17e   :  { %392 = vrot.lane.b32.xlu2 %v609_v16, %s556_s21 }
 0x181   :  { %v273_v37 = vpop.permute.xlu0 %272 }
 0x182   :  { %v278_v39 = vsel %vm133_vm14, %v273_v37, 0.0 }
 0x189   :  { %v343_v45 = vpop.permute.xlu0 %342 }
 0x18a   :  { %v348_v47 = vsel %vm133_vm14, %v343_v45, 0.0 }
 0x192   :  { %v173_v22 = vpop.permute.xlu1 %172 }
 0x193   :  { %v177_v38 = vsel %vm133_vm14, %v173_v22, 0.0 }
 0x198   :  { %v212_v10 = vpop.xlane.xlu2 %211 }
 0x199   :  { %519 = vlog2.f32 %v212_v10  ;;  %v38_v10 = vmax.f32 %v37_v51, 0.0 }
 0x19f   :  { %v520_v11 = vpop.eup %519 }
 0x1a0   :  { %v217_v12 = vmul.f32 0.6931472, %v520_v11  ;;  %v363_v13 = vpop.permute.xlu2 %362 }
 0x1a1   :  { %v368_v14 = vmul.f32 %v363_v13, %v599_v8 }
 0x1a2   :  { %v220_v15 = vadd.f32 %v217_v12, %v629_v20 }
 0x1a3   :  { %372 = vrot.lane.b32.xlu0 %v368_v14, %s556_s21 }
 0x1a4   :  { %v246_v18 = vsub.f32 %v220_v15, %v242_v17 }
 0x1a6   :  { %v248_v19 = vmul.f32 %v246_v18, %v599_v8 }
 0x1ab   :  { %252 = vrot.lane.b32.xlu0 %v248_v19, %s558_s22 }
 0x1b3   :  { %390 = vrot.lane.b32.xlu0 %v599_v8, %s556_s21 }
 0x1bd   :  { %v215_v23 = vpop.xlane.xlu1 %214 }
 0x1be   :  { %521 = vlog2.f32 %v215_v23 }
 0x1bf   :  { %523 = vpow2.f32 %v41_v58 }
 0x1c4   :  { %v522_v24 = vpop.eup %521 }
 0x1c5   :  { %v219_v25 = vmul.f32 0.6931472, %v522_v24  ;;  %v524_v59 = vpop.eup %523 }
 0x1c6   :  { %v43_v61 = vadd.f32 1.0, %v524_v59  ;;  %v46_v62 = vmul.f32 -0.5, %v524_v59  ;;  %v49_v7 = vand.u32 2147483647, %v524_v59 }
 0x1c7   :  { %v221_v26 = vadd.f32 %v219_v25, %v631_v21 }
 0x1c8   :  { %525 = vlog2.f32 %v43_v61  ;;  %v47_v3 = vadd.f32 1.0, %v46_v62  ;;  %vm50_vm15 = vcmp.lt.f32.partialorder %v49_v7, 0.0004427343 }
 0x1c9   :  { %v247_v27 = vsub.f32 %v221_v26, %v245_v9 }
 0x1ca   :  { %v48_v42 = vmul.f32 %v524_v59, %v47_v3 }
 0x1cb   :  { %v249_v20 = vmul.f32 %v247_v27, %v609_v16  ;;  %v176_v16 = vsel %vm133_vm14, %v171_v36, 0.0 }
 0x1cc   :  { %v178_v41 = vadd.f32 %v177_v38, %v176_v16 }
 0x1cd   :  { %254 = vrot.lane.b32.xlu1 %v249_v20, %s558_s22 }
 0x1ce   :  { %v526_v5 = vpop.eup %525 }
 0x1cf   :  { %v45_v0 = vmul.f32 0.6931472, %v526_v5 }
 0x1d1   :  { %v51_v12 = vsel %vm50_vm15, %v48_v42, %v45_v0 }
 0x1d2   :  { %v52_v14 = vadd.f32 %v51_v12, %v38_v10 }
 0x1d4   :  { %v53_v15 = vmin.f32 %v52_v14, 100.0 }
 0x1d5   :  { %374 = vrot.lane.b32.xlu1 %v369_v29, %s556_s21  ;;  %v275_v21 = vpop.permute.xlu1 %274 }
 0x1d6   :  { %v279_v40 = vsel %vm133_vm14, %v275_v21, 0.0 }
 0x1d7   :  { %v280_v43 = vadd.f32 %v279_v40, %v278_v39 }
 0x1d9   :  { %v138_v30 = vpop.xlane.xlu2 %137  ;;  %281 = vadd.xlane.f32.xlu2 %v280_v43 }
 0x1da   :  { %v139_v31 = vrot.slane %v138_v30, 4 }
 0x1dc   :  { %v140_v8 = vadd.f32 %v139_v31, %v138_v30 }
 0x1dd   :  { %v345_v44 = vpop.permute.xlu1 %344 }
 0x1de   :  { %v141_v32 = vrot.slane %v140_v8, 2  ;;  %v349_v46 = vsel %vm133_vm14, %v345_v44, 0.0 }
 0x1df   :  { %v350_v48 = vadd.f32 %v349_v46, %v348_v47 }
 0x1e0   :  { %v142_v33 = vadd.f32 %v141_v32, %v140_v8 }
 0x1e1   :  { %v393_v54 = vpop.permute.xlu2 %392 }
 0x1e2   :  { %v143_v34 = vrot.slane %v142_v33, 1  ;;  %v397_v57 = vsel %vm133_vm14, %v393_v54, 0.0 }
 0x1e4   :  { %v144_v35 = vadd.f32 %v143_v34, %v142_v33 }
 0x1e6   :  { %474 = vpush %v144_v35 }
 0x1ff   :  { %179 = vadd.xlane.f32.xlu1 %v178_v41 }
 0x207   :  { %351 = vadd.xlane.f32.xlu1 %v350_v48 }
 0x215   :  { %v373_v49 = vpop.permute.xlu0 %372 }
 0x216   :  { %v378_v63 = vsel %vm133_vm14, %v373_v49, 0.0 }
 0x217   :  { %s475_s2 = spop %474 }
 0x218   :  { %v422_v5 = vstv %s475_s2 }
 0x21d   :  { %v253_v50 = vpop.permute.xlu0 %252 }
 0x21e   :  { %v258_v11 = vsel %vm133_vm14, %v253_v50, 0.0 }
 0x225   :  { %v391_v53 = vpop.permute.xlu0 %390 }
 0x226   :  { %v396_v56 = vsel %vm133_vm14, %v391_v53, 0.0 }
 0x227   :  { %v398_v4 = vadd.f32 %v397_v57, %v396_v56 }
 0x229   :  { %399 = vadd.xlane.f32.xlu1 %v398_v4 }
 0x23f   :  { %v255_v60 = vpop.permute.xlu1 %254 }
 0x240   :  { %v259_v9 = vsel %vm133_vm14, %v255_v60, 0.0 }
 0x241   :  { %v260_v13 = vadd.f32 %v259_v9, %v258_v11 }
 0x247   :  { %v375_v1 = vpop.permute.xlu1 %374 }
 0x248   :  { %v379_v2 = vsel %vm133_vm14, %v375_v1, 0.0  ;;  %v419_v1 = vlaneseq }
 0x249   :  { %v380_v6 = vadd.f32 %v379_v2, %v378_v63 }
 0x24a   :  { %v420_v2 = vand.u32 127, %v419_v1 }
 0x24b   :  { %381 = vadd.xlane.f32.xlu0 %v380_v6 }
 0x24c   :  { %v282_v27 = vpop.xlane.xlu2 %281  ;;  %vm425_vm0 = vcmp.eq.s32.totalorder %v420_v2, 1  ;;  %vm421_vm1 = vcmp.eq.s32.totalorder %v420_v2, 0  ;;  %vm429_vm2 = vcmp.eq.s32.totalorder %v420_v2, 2  ;;  %vm433_vm3 = vcmp.eq.s32.totalorder %v420_v2, 3 }
 0x24d   :  { %v283_v28 = vrot.slane %v282_v27, 4  ;;  %v423_v7 = vsel %vm421_vm1, %v422_v5, 0.0  ;;  %vm437_vm4 = vcmp.eq.s32.totalorder %v420_v2, 4  ;;  %vm441_vm5 = vcmp.eq.s32.totalorder %v420_v2, 5 }
 0x24e   :  { %vm445_vm6 = vcmp.eq.s32.totalorder %v420_v2, 6 }
 0x24f   :  { %v284_v32 = vadd.f32 %v283_v28, %v282_v27 }
 0x251   :  { %v285_v36 = vrot.slane %v284_v32, 2 }
 0x253   :  { %261 = vadd.xlane.f32.xlu0 %v260_v13  ;;  %v286_v41 = vadd.f32 %v285_v36, %v284_v32 }
 0x255   :  { %v287_v49 = vrot.slane %v286_v41, 1 }
 0x257   :  { %v288_v57 = vadd.f32 %v287_v49, %v286_v41 }
 0x25b   :  { %409 = vadd.xlane.f32.xlu0 %v53_v15 }
 0x272   :  { %v180_v17 = vpop.xlane.xlu1 %179 }
 0x273   :  { %v181_v18 = vrot.slane %v180_v17, 4 }
 0x275   :  { %v182_v19 = vadd.f32 %v181_v18, %v180_v17 }
 0x277   :  { %v183_v22 = vrot.slane %v182_v19, 2 }
 0x279   :  { %v184_v23 = vadd.f32 %v183_v22, %v182_v19 }
 0x27a   :  { %v352_v26 = vpop.xlane.xlu1 %351 }
 0x27b   :  { %v185_v24 = vrot.slane %v184_v23, 1  ;;  %v353_v30 = vrot.slane %v352_v26, 4 }
 0x27d   :  { %v186_v25 = vadd.f32 %v185_v24, %v184_v23  ;;  %v354_v33 = vadd.f32 %v353_v30, %v352_v26 }
 0x27f   :  { %476 = vpush %v186_v25  ;;  %v355_v37 = vrot.slane %v354_v33, 2 }
 0x281   :  { %v356_v45 = vadd.f32 %v355_v37, %v354_v33 }
 0x283   :  { %v357_v52 = vrot.slane %v356_v45, 1 }
 0x285   :  { %v358_v4 = vadd.f32 %v357_v52, %v356_v45 }
 0x29c   :  { %v400_v20 = vpop.xlane.xlu1 %399 }
 0x29d   :  { %v401_v31 = vrot.slane %v400_v20, 4 }
 0x29f   :  { %v402_v34 = vadd.f32 %v401_v31, %v400_v20 }
 0x2a1   :  { %v403_v39 = vrot.slane %v402_v34, 2 }
 0x2a3   :  { %v404_v44 = vadd.f32 %v403_v39, %v402_v34 }
 0x2a5   :  { %v405_v53 = vrot.slane %v404_v44, 1 }
 0x2a7   :  { %v406_v59 = vadd.f32 %v405_v53, %v404_v44 }
 0x2b0   :  { %s477_s25 = spop %476 }
 0x2b1   :  { %v426_v3 = vstv %s477_s25 }
 0x2b2   :  { %v427_v6 = vsel %vm425_vm0, %v426_v3, 0.0 }
 0x2b3   :  { %v428_v0 = vadd.f32 %v427_v6, %v423_v7 }
 0x2be   :  { %v382_v29 = vpop.xlane.xlu0 %381 }
 0x2bf   :  { %v383_v8 = vrot.slane %v382_v29, 4 }
 0x2c1   :  { %v384_v35 = vadd.f32 %v383_v8, %v382_v29 }
 0x2c3   :  { %v385_v40 = vrot.slane %v384_v35, 2 }
 0x2c5   :  { %v386_v46 = vadd.f32 %v385_v40, %v384_v35 }
 0x2c6   :  { %v262_v21 = vpop.xlane.xlu0 %261 }
 0x2c7   :  { %v263_v38 = vrot.slane %v262_v21, 4  ;;  %v387_v54 = vrot.slane %v386_v46, 1 }
 0x2c9   :  { %v264_v16 = vadd.f32 %v263_v38, %v262_v21  ;;  %v388_v60 = vadd.f32 %v387_v54, %v386_v46 }
 0x2cb   :  { %v265_v43 = vrot.slane %v264_v16, 2 }
 0x2cd   :  { %v266_v47 = vadd.f32 %v265_v43, %v264_v16 }
 0x2ce   :  { %v410_v48 = vpop.xlane.xlu0 %409 }
 0x2cf   :  { %v411_v50 = vrot.slane %v410_v48, 4  ;;  %v267_v51 = vrot.slane %v266_v47, 1 }
 0x2d1   :  { %v412_v55 = vadd.f32 %v411_v50, %v410_v48  ;;  %v268_v56 = vadd.f32 %v267_v51, %v266_v47 }
 0x2d3   :  { %v413_v58 = vrot.slane %v412_v55, 2  ;;  %478 = vpush %v268_v56 }
 0x2d4   :  { %480 = vpush %v288_v57 }
 0x2d5   :  { %v414_v61 = vadd.f32 %v413_v58, %v412_v55  ;;  %482 = vpush %v358_v4 }
 0x2d6   :  { %484 = vpush %v388_v60 }
 0x2d7   :  { %486 = vpush %v406_v59  ;;  %v415_v62 = vrot.slane %v414_v61, 1 }
 0x2d9   :  { %v416_v63 = vadd.f32 %v415_v62, %v414_v61 }
 0x2db   :  { %488 = vpush %v416_v63 }
 0x304   :  { %s479_s26 = spop %478 }
 0x305   :  { %v430_v42 = vstv %s479_s26  ;;  %s481_s27 = spop %480 }
 0x306   :  { %v431_v9 = vsel %vm429_vm2, %v430_v42, 0.0  ;;  %v434_v11 = vstv %s481_s27  ;;  %s483_s28 = spop %482 }
 0x307   :  { %v432_v10 = vadd.f32 %v431_v9, %v428_v0  ;;  %v435_v12 = vsel %vm433_vm3, %v434_v11, 0.0  ;;  %s485_s29 = spop %484  ;;  %v438_v14 = vstv %s483_s28 }
 0x308   :  { %s487_s30 = spop %486  ;;  %v439_v15 = vsel %vm437_vm4, %v438_v14, 0.0 }
 0x309   :  { %v436_v13 = vadd.f32 %v435_v12, %v432_v10  ;;  %v446_v18 = vstv %s487_s30 }
 0x30a   :  { %v447_v24 = vsel %vm445_vm6, %v446_v18, 0.0 }
 0x30b   :  { %v440_v17 = vadd.f32 %v439_v15, %v436_v13 }
 0x30c   :  { %s489_s4 = spop %488 }
 0x30d   :  { %s418_s5 = ssub.f32 %s489_s4, %s485_s29 }
 0x30f   :  { %v442_v19 = vstv %s418_s5 }
 0x310   :  { %v443_v22 = vsel %vm441_vm5, %v442_v19, 0.0 }
 0x311   :  { %v444_v23 = vadd.f32 %v443_v22, %v440_v17 }
 0x313   :  { %v448_v25 = vadd.f32 %v447_v24, %v444_v23 }
 0x315   :  { %449 = vst [vmem:[#allocation3] sm:$0xff] %v448_v25 }
 0x316   :  { %460 = dma.vmem_to_hbm [thread:$0]  %s456_s7, 128, %s458_s10, [#allocation4]  }
 0x317   :  { %551 = dma.done.wait [#allocation4], 128  }
 0x318   :  { %552 = vsyncadd [#allocation4], 4294967168 }
 0x319   :  { %465 = vsyncpa [#allocation4], 1 }

</bundles_post_ra>
